<compile_context>
chip_gen: v7x
topology: tpu7x:2x2x1
jax: 0.10.0
libtpu: 0.0.40
codegen_flags: <defaults>
</compile_context>

<pallas_src>
import functools
import math

import jax
import jax.numpy as jnp
from jax.experimental import pallas as pl

D_MODEL = 32
NHEAD = 4
HEAD_DIM = D_MODEL // NHEAD
DIM_FF = 64
LN_EPS = 1e-5
NEG_INF = -1e30


def _layernorm_rows(x, gamma, beta):
    mu = jnp.mean(x, axis=-1, keepdims=True)
    var = jnp.mean((x - mu) ** 2, axis=-1, keepdims=True)
    return (x - mu) * jax.lax.rsqrt(var + LN_EPS) * gamma + beta


def _encoder_layer_kernel(x_ref, bias_ref,
                          wqkv_ref, bqkv_ref, wo_ref, bo_ref,
                          w1_ref, b1_ref, w2_ref, b2_ref,
                          g1_ref, be1_ref, g2_ref, be2_ref,
                          o_ref, *, nhead, head_dim):
    x = x_ref[...]                       # (R, D), R = S*B rows (batch-interleaved)
    D = x.shape[-1]
    bias = bias_ref[...]                 # (R, R): 0 for same-batch, -1e30 cross-batch

    # ---- QKV projection for all rows / batches at once (weights pre-transposed) ----
    qkv = jnp.dot(x, wqkv_ref[...], preferred_element_type=jnp.float32) + bqkv_ref[...]
    scale = 1.0 / math.sqrt(head_dim)
    q = qkv[:, 0 * D:1 * D] * scale
    k = qkv[:, 1 * D:2 * D]
    v = qkv[:, 2 * D:3 * D]

    # ---- self-attention: one (R, R) score matmul per head covering all batches;
    #      cross-batch pairs are masked out by the additive bias. ----
    head_outs = []
    for h in range(nhead):               # static unroll (nhead = 4)
        sl = slice(h * head_dim, (h + 1) * head_dim)
        qh, kh, vh = q[:, sl], k[:, sl], v[:, sl]
        s = jax.lax.dot_general(qh, kh, (((1,), (1,)), ((), ())),
                                preferred_element_type=jnp.float32)   # (R, R)
        s = s + bias
        s = s - jnp.max(s, axis=-1, keepdims=True)
        p = jnp.exp(s)                   # masked entries underflow to exactly 0
        inv = pl.reciprocal(jnp.sum(p, axis=-1, keepdims=True), approx=True)
        p = p * inv
        head_outs.append(jnp.dot(p, vh, preferred_element_type=jnp.float32))
    att = jnp.concatenate(head_outs, axis=-1)                         # (R, D)
    att = jnp.dot(att, wo_ref[...], preferred_element_type=jnp.float32) + bo_ref[...]

    # ---- residual + LayerNorm1 (dropout1 identity at inference) ----
    x1 = _layernorm_rows(x + att, g1_ref[...], be1_ref[...])

    # ---- feed-forward: linear1 -> relu -> linear2 (dropout identity) ----
    hdn = jnp.dot(x1, w1_ref[...], preferred_element_type=jnp.float32) + b1_ref[...]
    hdn = jnp.maximum(hdn, 0.0)
    ff = jnp.dot(hdn, w2_ref[...], preferred_element_type=jnp.float32) + b2_ref[...]

    # ---- residual + LayerNorm2 (dropout2 identity) ----
    o_ref[...] = _layernorm_rows(x1 + ff, g2_ref[...], be2_ref[...])


def transformer_encoder_layer(src_sbd, params):
    """src_sbd: (S, B, D) float32 (PyTorch seq-first layout)."""
    S, B, D = src_sbd.shape
    R = S * B
    x2d = src_sbd.reshape(R, D)          # free contiguous reshape: row r = s*B + b

    # Additive attention bias enforcing same-batch attention on the interleaved
    # rows (batch of row r is r % B).
    # NOTE: at real model sizes you would tile attention per batch instead of
    # materializing an (R, R) bias.
    rid = jnp.arange(R, dtype=jnp.int32)
    same_batch = (rid[:, None] % B) == (rid[None, :] % B)
    attn_bias = jnp.where(same_batch, 0.0, NEG_INF).astype(jnp.float32)

    # Weights pre-transposed once here -> no in-kernel transposes.
    weights = (params['wqkv'].T, params['bqkv'], params['wo'].T, params['bo'],
               params['w1'].T, params['b1'], params['w2'].T, params['b2'],
               params['g1'], params['be1'], params['g2'], params['be2'])

    kernel = functools.partial(_encoder_layer_kernel,
                               nhead=NHEAD, head_dim=HEAD_DIM)
    out2d = pl.pallas_call(
        kernel,
        out_shape=jax.ShapeDtypeStruct((R, D), jnp.float32),
    )(x2d, attn_bias, *weights)
    return out2d.reshape(S, B, D)


# ---------------- pure-JAX reference for validation ----------------
def _layernorm(x, g, b):
    mu = jnp.mean(x, axis=-1, keepdims=True)
    var = jnp.mean((x - mu) ** 2, axis=-1, keepdims=True)
    return (x - mu) * jax.lax.rsqrt(var + LN_EPS) * g + b


def reference_layer(src_sbd, p):
    x = jnp.transpose(src_sbd, (1, 0, 2))  # (B, S, D)
    B, S, D = x.shape
    qkv = x @ p['wqkv'].T + p['bqkv'][0]
    q, k, v = jnp.split(qkv, 3, axis=-1)

    def heads(t):
        return t.reshape(B, S, NHEAD, HEAD_DIM).transpose(0, 2, 1, 3)

    qh, kh, vh = heads(q), heads(k), heads(v)
    s = jnp.einsum('bhqd,bhkd->bhqk', qh * (1.0 / math.sqrt(HEAD_DIM)), kh)
    a = jax.nn.softmax(s, axis=-1)
    o = jnp.einsum('bhqk,bhkd->bhqd', a, vh).transpose(0, 2, 1, 3).reshape(B, S, D)
    att = o @ p['wo'].T + p['bo'][0]
    x1 = _layernorm(x + att, p['g1'][0], p['be1'][0])
    ff = jax.nn.relu(x1 @ p['w1'].T + p['b1'][0]) @ p['w2'].T + p['b2'][0]
    x2 = _layernorm(x1 + ff, p['g2'][0], p['be2'][0])
    return jnp.transpose(x2, (1, 0, 2))


if __name__ == "__main__":
    S, B, D, F = 8, 2, D_MODEL, DIM_FF
    key = jax.random.PRNGKey(0)
    ks = jax.random.split(key, 10)

    params = {
        'wqkv': 0.1 * jax.random.normal(ks[0], (3 * D, D), jnp.float32),
        'bqkv': 0.1 * jax.random.normal(ks[1], (1, 3 * D), jnp.float32),
        'wo':   0.1 * jax.random.normal(ks[2], (D, D), jnp.float32),
        'bo':   0.1 * jax.random.normal(ks[3], (1, D), jnp.float32),
        'w1':   0.1 * jax.random.normal(ks[4], (F, D), jnp.float32),
        'b1':   0.1 * jax.random.normal(ks[5], (1, F), jnp.float32),
        'w2':   0.1 * jax.random.normal(ks[6], (D, F), jnp.float32),
        'b2':   0.1 * jax.random.normal(ks[7], (1, D), jnp.float32),
        'g1':   jnp.ones((1, D), jnp.float32),
        'be1':  jnp.zeros((1, D), jnp.float32),
        'g2':   jnp.ones((1, D), jnp.float32),
        'be2':  jnp.zeros((1, D), jnp.float32),
    }

    src = jax.random.normal(ks[8], (S, B, D), jnp.float32)

    out = transformer_encoder_layer(src, params)
    out = jax.block_until_ready(out)

    ref = reference_layer(src, params)
    assert out.shape == (S, B, D)
    # Tolerance accommodates pl.reciprocal(approx=True) in the softmax; any
    # semantic error would produce O(0.1-1) deviations, far above this bound.
    assert jnp.allclose(out, ref, atol=1e-3, rtol=1e-3), "mismatch vs pure-JAX reference"

    print("KERNEL_OK")
</pallas_src>

<mosaic_0001>
module attributes {stable_mosaic.version = 11 : i64} {
  func.func @_encoder_layer_kernel(%arg0: memref<16x32xf32, #tpu.memory_space<vmem>>, %arg1: memref<16x16xf32, #tpu.memory_space<vmem>>, %arg2: memref<32x96xf32, #tpu.memory_space<vmem>>, %arg3: memref<1x96xf32, #tpu.memory_space<vmem>>, %arg4: memref<32x32xf32, #tpu.memory_space<vmem>>, %arg5: memref<1x32xf32, #tpu.memory_space<vmem>>, %arg6: memref<32x64xf32, #tpu.memory_space<vmem>>, %arg7: memref<1x64xf32, #tpu.memory_space<vmem>>, %arg8: memref<64x32xf32, #tpu.memory_space<vmem>>, %arg9: memref<1x32xf32, #tpu.memory_space<vmem>>, %arg10: memref<1x32xf32, #tpu.memory_space<vmem>>, %arg11: memref<1x32xf32, #tpu.memory_space<vmem>>, %arg12: memref<1x32xf32, #tpu.memory_space<vmem>>, %arg13: memref<1x32xf32, #tpu.memory_space<vmem>>, %arg14: memref<16x32xf32, #tpu.memory_space<vmem>>) attributes {dimension_semantics = [], scalar_prefetch = 0 : i64, scratch_operands = 0 : i64, tpu.core_type = #tpu.core_type<tc>} {
    %c0 = arith.constant 0 : index
    %c0_0 = arith.constant 0 : index
    %0 = vector.load %arg0[%c0, %c0_0] : memref<16x32xf32, #tpu.memory_space<vmem>>, vector<16x32xf32>
    %c0_1 = arith.constant 0 : index
    %c0_2 = arith.constant 0 : index
    %1 = vector.load %arg1[%c0_1, %c0_2] : memref<16x16xf32, #tpu.memory_space<vmem>>, vector<16x16xf32>
    %c0_3 = arith.constant 0 : index
    %c0_4 = arith.constant 0 : index
    %2 = vector.load %arg2[%c0_3, %c0_4] : memref<32x96xf32, #tpu.memory_space<vmem>>, vector<32x96xf32>
    %cst = arith.constant dense<0.000000e+00> : vector<16x96xf32>
    %3 = tpu.matmul %0, %2, %cst {dimension_numbers = #tpu.dot_dimension_numbers<[1], [0], [0], [1], [0, 0, 1, 1], [], []>} : vector<16x32xf32>, vector<32x96xf32>, vector<16x96xf32> -> vector<16x96xf32>
    %c0_5 = arith.constant 0 : index
    %c0_6 = arith.constant 0 : index
    %4 = vector.load %arg3[%c0_5, %c0_6] : memref<1x96xf32, #tpu.memory_space<vmem>>, vector<1x96xf32>
    %5 = vector.broadcast %4 : vector<1x96xf32> to vector<16x96xf32>
    %6 = arith.addf %3, %5 : vector<16x96xf32>
    %7 = vector.extract_strided_slice %6 {offsets = [0, 0], sizes = [16, 32], strides = [1, 1]} : vector<16x96xf32> to vector<16x32xf32>
    %cst_7 = arith.constant 0.353553385 : f32
    %8 = vector.broadcast %cst_7 : f32 to vector<16x32xf32>
    %9 = arith.mulf %7, %8 : vector<16x32xf32>
    %10 = vector.extract_strided_slice %6 {offsets = [0, 32], sizes = [16, 32], strides = [1, 1]} : vector<16x96xf32> to vector<16x32xf32>
    %11 = vector.extract_strided_slice %6 {offsets = [0, 64], sizes = [16, 32], strides = [1, 1]} : vector<16x96xf32> to vector<16x32xf32>
    %12 = vector.extract_strided_slice %9 {offsets = [0, 0], sizes = [16, 8], strides = [1, 1]} : vector<16x32xf32> to vector<16x8xf32>
    %13 = vector.extract_strided_slice %10 {offsets = [0, 0], sizes = [16, 8], strides = [1, 1]} : vector<16x32xf32> to vector<16x8xf32>
    %14 = vector.extract_strided_slice %11 {offsets = [0, 0], sizes = [16, 8], strides = [1, 1]} : vector<16x32xf32> to vector<16x8xf32>
    %cst_8 = arith.constant dense<0.000000e+00> : vector<16x16xf32>
    %15 = tpu.matmul %12, %13, %cst_8 {dimension_numbers = #tpu.dot_dimension_numbers<[1], [1], [0], [0], [0, 0, 1, 0], [], []>} : vector<16x8xf32>, vector<16x8xf32>, vector<16x16xf32> -> vector<16x16xf32>
    %16 = arith.addf %15, %1 : vector<16x16xf32>
    %cst_9 = arith.constant dense<0xFF800000> : vector<16xf32>
    %17 = vector.multi_reduction <maximumf>, %16, %cst_9 [1] : vector<16x16xf32> to vector<16xf32>
    %18 = vector.shape_cast %17 : vector<16xf32> to vector<16x1xf32>
    %19 = vector.broadcast %18 : vector<16x1xf32> to vector<16x16xf32>
    %20 = arith.subf %16, %19 : vector<16x16xf32>
    %21 = math.exp %20 : vector<16x16xf32>
    %cst_10 = arith.constant dense<0.000000e+00> : vector<16xf32>
    %22 = vector.multi_reduction <add>, %21, %cst_10 [1] : vector<16x16xf32> to vector<16xf32>
    %23 = vector.shape_cast %22 : vector<16xf32> to vector<16x1xf32>
    %24 = tpu.reciprocal %23 {approx = true} : vector<16x1xf32> -> vector<16x1xf32>
    %25 = vector.broadcast %24 : vector<16x1xf32> to vector<16x16xf32>
    %26 = arith.mulf %21, %25 : vector<16x16xf32>
    %cst_11 = arith.constant dense<0.000000e+00> : vector<16x8xf32>
    %27 = tpu.matmul %26, %14, %cst_11 {dimension_numbers = #tpu.dot_dimension_numbers<[1], [0], [0], [1], [0, 0, 1, 1], [], []>} : vector<16x16xf32>, vector<16x8xf32>, vector<16x8xf32> -> vector<16x8xf32>
    %28 = vector.extract_strided_slice %9 {offsets = [0, 8], sizes = [16, 8], strides = [1, 1]} : vector<16x32xf32> to vector<16x8xf32>
    %29 = vector.extract_strided_slice %10 {offsets = [0, 8], sizes = [16, 8], strides = [1, 1]} : vector<16x32xf32> to vector<16x8xf32>
    %30 = vector.extract_strided_slice %11 {offsets = [0, 8], sizes = [16, 8], strides = [1, 1]} : vector<16x32xf32> to vector<16x8xf32>
    %cst_12 = arith.constant dense<0.000000e+00> : vector<16x16xf32>
    %31 = tpu.matmul %28, %29, %cst_12 {dimension_numbers = #tpu.dot_dimension_numbers<[1], [1], [0], [0], [0, 0, 1, 0], [], []>} : vector<16x8xf32>, vector<16x8xf32>, vector<16x16xf32> -> vector<16x16xf32>
    %32 = arith.addf %31, %1 : vector<16x16xf32>
    %cst_13 = arith.constant dense<0xFF800000> : vector<16xf32>
    %33 = vector.multi_reduction <maximumf>, %32, %cst_13 [1] : vector<16x16xf32> to vector<16xf32>
    %34 = vector.shape_cast %33 : vector<16xf32> to vector<16x1xf32>
    %35 = vector.broadcast %34 : vector<16x1xf32> to vector<16x16xf32>
    %36 = arith.subf %32, %35 : vector<16x16xf32>
    %37 = math.exp %36 : vector<16x16xf32>
    %cst_14 = arith.constant dense<0.000000e+00> : vector<16xf32>
    %38 = vector.multi_reduction <add>, %37, %cst_14 [1] : vector<16x16xf32> to vector<16xf32>
    %39 = vector.shape_cast %38 : vector<16xf32> to vector<16x1xf32>
    %40 = tpu.reciprocal %39 {approx = true} : vector<16x1xf32> -> vector<16x1xf32>
    %41 = vector.broadcast %40 : vector<16x1xf32> to vector<16x16xf32>
    %42 = arith.mulf %37, %41 : vector<16x16xf32>
    %cst_15 = arith.constant dense<0.000000e+00> : vector<16x8xf32>
    %43 = tpu.matmul %42, %30, %cst_15 {dimension_numbers = #tpu.dot_dimension_numbers<[1], [0], [0], [1], [0, 0, 1, 1], [], []>} : vector<16x16xf32>, vector<16x8xf32>, vector<16x8xf32> -> vector<16x8xf32>
    %44 = vector.extract_strided_slice %9 {offsets = [0, 16], sizes = [16, 8], strides = [1, 1]} : vector<16x32xf32> to vector<16x8xf32>
    %45 = vector.extract_strided_slice %10 {offsets = [0, 16], sizes = [16, 8], strides = [1, 1]} : vector<16x32xf32> to vector<16x8xf32>
    %46 = vector.extract_strided_slice %11 {offsets = [0, 16], sizes = [16, 8], strides = [1, 1]} : vector<16x32xf32> to vector<16x8xf32>
    %cst_16 = arith.constant dense<0.000000e+00> : vector<16x16xf32>
    %47 = tpu.matmul %44, %45, %cst_16 {dimension_numbers = #tpu.dot_dimension_numbers<[1], [1], [0], [0], [0, 0, 1, 0], [], []>} : vector<16x8xf32>, vector<16x8xf32>, vector<16x16xf32> -> vector<16x16xf32>
    %48 = arith.addf %47, %1 : vector<16x16xf32>
    %cst_17 = arith.constant dense<0xFF800000> : vector<16xf32>
    %49 = vector.multi_reduction <maximumf>, %48, %cst_17 [1] : vector<16x16xf32> to vector<16xf32>
    %50 = vector.shape_cast %49 : vector<16xf32> to vector<16x1xf32>
    %51 = vector.broadcast %50 : vector<16x1xf32> to vector<16x16xf32>
    %52 = arith.subf %48, %51 : vector<16x16xf32>
    %53 = math.exp %52 : vector<16x16xf32>
    %cst_18 = arith.constant dense<0.000000e+00> : vector<16xf32>
    %54 = vector.multi_reduction <add>, %53, %cst_18 [1] : vector<16x16xf32> to vector<16xf32>
    %55 = vector.shape_cast %54 : vector<16xf32> to vector<16x1xf32>
    %56 = tpu.reciprocal %55 {approx = true} : vector<16x1xf32> -> vector<16x1xf32>
    %57 = vector.broadcast %56 : vector<16x1xf32> to vector<16x16xf32>
    %58 = arith.mulf %53, %57 : vector<16x16xf32>
    %cst_19 = arith.constant dense<0.000000e+00> : vector<16x8xf32>
    %59 = tpu.matmul %58, %46, %cst_19 {dimension_numbers = #tpu.dot_dimension_numbers<[1], [0], [0], [1], [0, 0, 1, 1], [], []>} : vector<16x16xf32>, vector<16x8xf32>, vector<16x8xf32> -> vector<16x8xf32>
    %60 = vector.extract_strided_slice %9 {offsets = [0, 24], sizes = [16, 8], strides = [1, 1]} : vector<16x32xf32> to vector<16x8xf32>
    %61 = vector.extract_strided_slice %10 {offsets = [0, 24], sizes = [16, 8], strides = [1, 1]} : vector<16x32xf32> to vector<16x8xf32>
    %62 = vector.extract_strided_slice %11 {offsets = [0, 24], sizes = [16, 8], strides = [1, 1]} : vector<16x32xf32> to vector<16x8xf32>
    %cst_20 = arith.constant dense<0.000000e+00> : vector<16x16xf32>
    %63 = tpu.matmul %60, %61, %cst_20 {dimension_numbers = #tpu.dot_dimension_numbers<[1], [1], [0], [0], [0, 0, 1, 0], [], []>} : vector<16x8xf32>, vector<16x8xf32>, vector<16x16xf32> -> vector<16x16xf32>
    %64 = arith.addf %63, %1 : vector<16x16xf32>
    %cst_21 = arith.constant dense<0xFF800000> : vector<16xf32>
    %65 = vector.multi_reduction <maximumf>, %64, %cst_21 [1] : vector<16x16xf32> to vector<16xf32>
    %66 = vector.shape_cast %65 : vector<16xf32> to vector<16x1xf32>
    %67 = vector.broadcast %66 : vector<16x1xf32> to vector<16x16xf32>
    %68 = arith.subf %64, %67 : vector<16x16xf32>
    %69 = math.exp %68 : vector<16x16xf32>
    %cst_22 = arith.constant dense<0.000000e+00> : vector<16xf32>
    %70 = vector.multi_reduction <add>, %69, %cst_22 [1] : vector<16x16xf32> to vector<16xf32>
    %71 = vector.shape_cast %70 : vector<16xf32> to vector<16x1xf32>
    %72 = tpu.reciprocal %71 {approx = true} : vector<16x1xf32> -> vector<16x1xf32>
    %73 = vector.broadcast %72 : vector<16x1xf32> to vector<16x16xf32>
    %74 = arith.mulf %69, %73 : vector<16x16xf32>
    %cst_23 = arith.constant dense<0.000000e+00> : vector<16x8xf32>
    %75 = tpu.matmul %74, %62, %cst_23 {dimension_numbers = #tpu.dot_dimension_numbers<[1], [0], [0], [1], [0, 0, 1, 1], [], []>} : vector<16x16xf32>, vector<16x8xf32>, vector<16x8xf32> -> vector<16x8xf32>
    %76 = tpu.concatenate %27, %43, %59, %75 in 1 : vector<16x8xf32>, vector<16x8xf32>, vector<16x8xf32>, vector<16x8xf32> -> vector<16x32xf32>
    %c0_24 = arith.constant 0 : index
    %c0_25 = arith.constant 0 : index
    %77 = vector.load %arg4[%c0_24, %c0_25] : memref<32x32xf32, #tpu.memory_space<vmem>>, vector<32x32xf32>
    %cst_26 = arith.constant dense<0.000000e+00> : vector<16x32xf32>
    %78 = tpu.matmul %76, %77, %cst_26 {dimension_numbers = #tpu.dot_dimension_numbers<[1], [0], [0], [1], [0, 0, 1, 1], [], []>} : vector<16x32xf32>, vector<32x32xf32>, vector<16x32xf32> -> vector<16x32xf32>
    %c0_27 = arith.constant 0 : index
    %c0_28 = arith.constant 0 : index
    %79 = vector.load %arg5[%c0_27, %c0_28] : memref<1x32xf32, #tpu.memory_space<vmem>>, vector<1x32xf32>
    %80 = vector.broadcast %79 : vector<1x32xf32> to vector<16x32xf32>
    %81 = arith.addf %78, %80 : vector<16x32xf32>
    %82 = arith.addf %0, %81 : vector<16x32xf32>
    %c0_29 = arith.constant 0 : index
    %c0_30 = arith.constant 0 : index
    %83 = vector.load %arg10[%c0_29, %c0_30] : memref<1x32xf32, #tpu.memory_space<vmem>>, vector<1x32xf32>
    %c0_31 = arith.constant 0 : index
    %c0_32 = arith.constant 0 : index
    %84 = vector.load %arg11[%c0_31, %c0_32] : memref<1x32xf32, #tpu.memory_space<vmem>>, vector<1x32xf32>
    %cst_33 = arith.constant dense<0.000000e+00> : vector<16xf32>
    %85 = vector.multi_reduction <add>, %82, %cst_33 [1] : vector<16x32xf32> to vector<16xf32>
    %86 = vector.shape_cast %85 : vector<16xf32> to vector<16x1xf32>
    %cst_34 = arith.constant 3.200000e+01 : f32
    %87 = vector.broadcast %cst_34 : f32 to vector<16x1xf32>
    %88 = arith.divf %86, %87 : vector<16x1xf32>
    %89 = vector.broadcast %88 : vector<16x1xf32> to vector<16x32xf32>
    %90 = arith.subf %82, %89 : vector<16x32xf32>
    %91 = arith.mulf %90, %90 : vector<16x32xf32>
    %cst_35 = arith.constant dense<0.000000e+00> : vector<16xf32>
    %92 = vector.multi_reduction <add>, %91, %cst_35 [1] : vector<16x32xf32> to vector<16xf32>
    %93 = vector.shape_cast %92 : vector<16xf32> to vector<16x1xf32>
    %cst_36 = arith.constant 3.200000e+01 : f32
    %94 = vector.broadcast %cst_36 : f32 to vector<16x1xf32>
    %95 = arith.divf %93, %94 : vector<16x1xf32>
    %96 = vector.broadcast %88 : vector<16x1xf32> to vector<16x32xf32>
    %97 = arith.subf %82, %96 : vector<16x32xf32>
    %cst_37 = arith.constant 9.99999974E-6 : f32
    %98 = vector.broadcast %cst_37 : f32 to vector<16x1xf32>
    %99 = arith.addf %95, %98 : vector<16x1xf32>
    %100 = math.rsqrt %99 : vector<16x1xf32>
    %101 = vector.broadcast %100 : vector<16x1xf32> to vector<16x32xf32>
    %102 = arith.mulf %97, %101 : vector<16x32xf32>
    %103 = vector.broadcast %83 : vector<1x32xf32> to vector<16x32xf32>
    %104 = arith.mulf %102, %103 : vector<16x32xf32>
    %105 = vector.broadcast %84 : vector<1x32xf32> to vector<16x32xf32>
    %106 = arith.addf %104, %105 : vector<16x32xf32>
    %c0_38 = arith.constant 0 : index
    %c0_39 = arith.constant 0 : index
    %107 = vector.load %arg6[%c0_38, %c0_39] : memref<32x64xf32, #tpu.memory_space<vmem>>, vector<32x64xf32>
    %cst_40 = arith.constant dense<0.000000e+00> : vector<16x64xf32>
    %108 = tpu.matmul %106, %107, %cst_40 {dimension_numbers = #tpu.dot_dimension_numbers<[1], [0], [0], [1], [0, 0, 1, 1], [], []>} : vector<16x32xf32>, vector<32x64xf32>, vector<16x64xf32> -> vector<16x64xf32>
    %c0_41 = arith.constant 0 : index
    %c0_42 = arith.constant 0 : index
    %109 = vector.load %arg7[%c0_41, %c0_42] : memref<1x64xf32, #tpu.memory_space<vmem>>, vector<1x64xf32>
    %110 = vector.broadcast %109 : vector<1x64xf32> to vector<16x64xf32>
    %111 = arith.addf %108, %110 : vector<16x64xf32>
    %cst_43 = arith.constant 0.000000e+00 : f32
    %112 = vector.broadcast %cst_43 : f32 to vector<16x64xf32>
    %113 = arith.maximumf %111, %112 : vector<16x64xf32>
    %c0_44 = arith.constant 0 : index
    %c0_45 = arith.constant 0 : index
    %114 = vector.load %arg8[%c0_44, %c0_45] : memref<64x32xf32, #tpu.memory_space<vmem>>, vector<64x32xf32>
    %cst_46 = arith.constant dense<0.000000e+00> : vector<16x32xf32>
    %115 = tpu.matmul %113, %114, %cst_46 {dimension_numbers = #tpu.dot_dimension_numbers<[1], [0], [0], [1], [0, 0, 1, 1], [], []>} : vector<16x64xf32>, vector<64x32xf32>, vector<16x32xf32> -> vector<16x32xf32>
    %c0_47 = arith.constant 0 : index
    %c0_48 = arith.constant 0 : index
    %116 = vector.load %arg9[%c0_47, %c0_48] : memref<1x32xf32, #tpu.memory_space<vmem>>, vector<1x32xf32>
    %117 = vector.broadcast %116 : vector<1x32xf32> to vector<16x32xf32>
    %118 = arith.addf %115, %117 : vector<16x32xf32>
    %119 = arith.addf %106, %118 : vector<16x32xf32>
    %c0_49 = arith.constant 0 : index
    %c0_50 = arith.constant 0 : index
    %120 = vector.load %arg12[%c0_49, %c0_50] : memref<1x32xf32, #tpu.memory_space<vmem>>, vector<1x32xf32>
    %c0_51 = arith.constant 0 : index
    %c0_52 = arith.constant 0 : index
    %121 = vector.load %arg13[%c0_51, %c0_52] : memref<1x32xf32, #tpu.memory_space<vmem>>, vector<1x32xf32>
    %cst_53 = arith.constant dense<0.000000e+00> : vector<16xf32>
    %122 = vector.multi_reduction <add>, %119, %cst_53 [1] : vector<16x32xf32> to vector<16xf32>
    %123 = vector.shape_cast %122 : vector<16xf32> to vector<16x1xf32>
    %cst_54 = arith.constant 3.200000e+01 : f32
    %124 = vector.broadcast %cst_54 : f32 to vector<16x1xf32>
    %125 = arith.divf %123, %124 : vector<16x1xf32>
    %126 = vector.broadcast %125 : vector<16x1xf32> to vector<16x32xf32>
    %127 = arith.subf %119, %126 : vector<16x32xf32>
    %128 = arith.mulf %127, %127 : vector<16x32xf32>
    %cst_55 = arith.constant dense<0.000000e+00> : vector<16xf32>
    %129 = vector.multi_reduction <add>, %128, %cst_55 [1] : vector<16x32xf32> to vector<16xf32>
    %130 = vector.shape_cast %129 : vector<16xf32> to vector<16x1xf32>
    %cst_56 = arith.constant 3.200000e+01 : f32
    %131 = vector.broadcast %cst_56 : f32 to vector<16x1xf32>
    %132 = arith.divf %130, %131 : vector<16x1xf32>
    %133 = vector.broadcast %125 : vector<16x1xf32> to vector<16x32xf32>
    %134 = arith.subf %119, %133 : vector<16x32xf32>
    %cst_57 = arith.constant 9.99999974E-6 : f32
    %135 = vector.broadcast %cst_57 : f32 to vector<16x1xf32>
    %136 = arith.addf %132, %135 : vector<16x1xf32>
    %137 = math.rsqrt %136 : vector<16x1xf32>
    %138 = vector.broadcast %137 : vector<16x1xf32> to vector<16x32xf32>
    %139 = arith.mulf %134, %138 : vector<16x32xf32>
    %140 = vector.broadcast %120 : vector<1x32xf32> to vector<16x32xf32>
    %141 = arith.mulf %139, %140 : vector<16x32xf32>
    %142 = vector.broadcast %121 : vector<1x32xf32> to vector<16x32xf32>
    %143 = arith.addf %141, %142 : vector<16x32xf32>
    %c0_58 = arith.constant 0 : index
    %c0_59 = arith.constant 0 : index
    %144 = vector.load %arg14[%c0_58, %c0_59] : memref<16x32xf32, #tpu.memory_space<vmem>>, vector<16x32xf32>
    tpu.vector_store %arg14[%c0_58, %c0_59], %143 {strides = array<i32>} : memref<16x32xf32, #tpu.memory_space<vmem>>, vector<16x32xf32>,
    return
  }
}

</mosaic_0001>

<bundles_post_ra>
// kernel: tpu_custom_call.1
= control target key start
LH: loop header
LB: loop body
LE: loop exit
PB: predicated region body
PF: predicated region fallthrough
CT: control target
= control target key end

     0   :  { %19 = vsyncpa [#allocation3], 0  ;;  %s2214_s0 = inlined_call_operand.hbm [shape: f32[16,32], index: 0, kind: input, shape index: {}]   ;;  %s2215_s1 = inlined_call_operand.hbm [shape: f32[16,16], index: 1, kind: input, shape index: {}]   ;;  %s2216_s2 = inlined_call_operand.vmem [shape: f32[32,96], index: 2, kind: input, shape index: {}]   ;;  %s2217_s3 = inlined_call_operand.vmem [shape: f32[1,96], index: 3, kind: input, shape index: {}]   ;;  %s2218_s4 = inlined_call_operand.vmem [shape: f32[32,32], index: 4, kind: input, shape index: {}]   ;;  %s2219_s5 = inlined_call_operand.vmem [shape: f32[1,32], index: 5, kind: input, shape index: {}]   ;;  %s2220_s6 = inlined_call_operand.vmem [shape: f32[32,64], index: 6, kind: input, shape index: {}]   ;;  %s2221_s7 = inlined_call_operand.vmem [shape: f32[1,64], index: 7, kind: input, shape index: {}]   ;;  %s2222_s8 = inlined_call_operand.vmem [shape: f32[64,32], index: 8, kind: input, shape index: {}]   ;;  %s2223_s9 = inlined_call_operand.vmem [shape: f32[1,32], index: 9, kind: input, shape index: {}]   ;;  %s2224_s10 = inlined_call_operand.vmem [shape: f32[1,32], index: 10, kind: input, shape index: {}]   ;;  %s2225_s11 = inlined_call_operand.vmem [shape: f32[1,32], index: 11, kind: input, shape index: {}]   ;;  %s2226_s12 = inlined_call_operand.vmem [shape: f32[1,32], index: 12, kind: input, shape index: {}]   ;;  %s2227_s13 = inlined_call_operand.vmem [shape: f32[1,32], index: 13, kind: input, shape index: {}]   ;;  %s2228_s14 = inlined_call_operand.hbm [shape: f32[16,32], index: 14, kind: output, shape index: {}]  }
   0x1   :  { %20 = vsyncpa [#allocation6], 0 }
   0x2   :  { %21 = vsyncpa [#allocation4], 0  ;;  %s1862_s29 = smov [#allocation2]   ;;  %s1790_s17 = scalar_lea.hbm %s2214_s0, 256 }
   0x3   :  { %s27_s30 = sshll.u32 %s1862_s29, 4  ;;  %p1791_p0 = scmp.ne.s32.totalorder %s2214_s0, %s1790_s17  ;;  %s28_s30 = int_to_ptr.vmem [resolvable:$true] %s27_s30 }
   0x4   :  { %p1794_p1 = scmp.lt.u32.totalorder %s1790_s17, %s2214_s0 }
   0x6   :  { %p1796_p2 = pnand %p1794_p1, %p1791_p0 }
   0x8   :  { %1799 = shalt.err (!%p1796_p2)
}
   0x9   :  { %s1800_s22 = scalar_lea.vmem %s28_s30, 256  ;;  %p1805_p4 = scmp.lt.s32.totalorder %s28_s30, %s28_s30 }
   0xa   :  { %p1801_p3 = scmp.ne.s32.totalorder %s28_s30, %s1800_s22  ;;  %p1806_p5 = scmp.lt.s32.totalorder %s1800_s22, %s1800_s22 }
   0xc   :  { %p1807_p6 = por %p1806_p5, %p1805_p4 }
   0xe   :  { %p1808_p7 = pnand %p1807_p6, %p1801_p3 }
  0x10   :  { %1811 = shalt.err (!%p1808_p7)
}
  0x11   :  { %s1863_s23 = smov 128   ;;  %s1864_s24 = smov 8  }
  0x12   :  { %33 = dma.hbm_to_vmem [thread:$0]  %s2214_s0, 256, %s28_s30, [#allocation3], %s1863_s23, %s1863_s23, %s1864_s24  }
  0x13   :  { %s1865_s27 = smov [#allocation5]   ;;  %s1812_s16 = scalar_lea.hbm %s2215_s1, 256 }
  0x14   :  { %s39_s28 = sshll.u32 %s1865_s27, 4  ;;  %p1813_p8 = scmp.ne.s32.totalorder %s2215_s1, %s1812_s16  ;;  %s40_s28 = int_to_ptr.vmem [resolvable:$true] %s39_s28 }
  0x15   :  { %p1816_p9 = scmp.lt.u32.totalorder %s1812_s16, %s2215_s1 }
  0x17   :  { %p1818_p10 = pnand %p1816_p9, %p1813_p8 }
  0x19   :  { %1821 = shalt.err (!%p1818_p10)
}
  0x1a   :  { %s1822_s21 = scalar_lea.vmem %s40_s28, 256  ;;  %p1827_p12 = scmp.lt.s32.totalorder %s40_s28, %s40_s28 }
  0x1b   :  { %p1823_p11 = scmp.ne.s32.totalorder %s40_s28, %s1822_s21  ;;  %p1828_p13 = scmp.lt.s32.totalorder %s1822_s21, %s1822_s21 }
  0x1d   :  { %p1829_p0 = por %p1828_p13, %p1827_p12 }
  0x1f   :  { %p1830_p1 = pnand %p1829_p0, %p1823_p11 }
  0x21   :  { %1833 = shalt.err (!%p1830_p1)
}
  0x22   :  { %45 = dma.hbm_to_vmem [thread:$0]  %s2215_s1, 256, %s40_s28, [#allocation6], %s1863_s23, %s1863_s23, %s1864_s24  }
  0x23   :  { %1856 = dma.done.wait [#allocation3], 256  }
  0x24   :  { %1857 = vsyncadd [#allocation3], 4294967040 }
  0x25   :  { %1858 = dma.done.wait [#allocation6], 256  }
  0x26   :  { %1859 = vsyncadd [#allocation6], 4294967040  ;;  %vm91_vm0 = vcmask 261120   ;;  %v80_v0 = vld [vmem:[%s2216_s2] sm:$0xff]  ;;  %v81_v1 = vld [vmem:[%s2216_s2 + $0x8] sm:$0xff]  ;;  %vm181_vm1 = vcmask 64512  }
  0x27   :  { %v82_v2 = vld [vmem:[%s2216_s2 + $0x10] sm:$0xff]  ;;  %v1612_v3 = vpack.c.bf16 %v81_v1, %v80_v0  ;;  %v83_v4 = vld [vmem:[%s2216_s2 + $0x18] sm:$0xff]  ;;  %v1997_v5 = vld [vmem:[#allocation2] sm:$0xff]  ;;  %s1866_s2 = smov 96   ;;  %s1867_s18 = smov 120   ;;  %vm267_vm3 = vcmask 130048  }
  0x28   :  { %v1616_v6 = vpack.c.bf16 %v83_v4, %v82_v2  ;;  %1512 = vmatprep.mubr.msk.f32.mxu1 %vm91_vm0, %v1997_v5  ;;  %v2001_v7 = vld [vmem:[#allocation2 + $0x8] sm:$0xff]  ;;  %v1404_v8 = vld [vmem:[%s2217_s3] ss:$0 sm:$0xff]  ;;  %s1868_s3 = smov 88   ;;  %vm2022_vm2 = vmpackc.low %vm181_vm1, %vm181_vm1  ;;  %s1869_s19 = smov 64   ;;  %vm1005_vm4 = vcmask 195584  }
  0x29   :  { %1613 = vmatprep.subr.bf16.mxu1 %v1612_v3  ;;  %v2038_v27 = vld [vmem:[#allocation5 + $0x8] sm:$0xff]  ;;  %v2040_v28 = vld [vmem:[#allocation5] sm:$0xff]  ;;  %s1870_s20 = smov 80   ;;  %s1871_s21 = smov 56   ;;  %vm1256_vm5 = vcmask 523264  }
  0x2a   :  { %1615 = vmatpush3.bf16.msra.mxu1 %v1612_v3  ;;  %s1872_s0 = smov 112   ;;  %s1873_s30 = smov 72  }
  0x2b   :  { %1617 = vmatprep.subr.bf16.mxu1 %v1616_v6  ;;  %s1874_s22 = smov 104   ;;  %s1875_s25 = smov 48  }
  0x2c   :  { %s1876_s26 = smov 40   ;;  %s1877_s27 = smov 16  }
  0x2d   :  { %s1879_s15 = smov [#allocation7]  }
  0x2e   :  { %1619 = vmatpush3.bf16.msra.mxu1 %v1616_v6  ;;  %s1391_s16 = sshll.u32 %s1879_s15, 4  ;;  %s1392_s16 = int_to_ptr.vmem [resolvable:$true] %s1391_s16 }
  0x2f   :  { %s1834_s1 = scalar_lea.vmem %s1392_s16, 256  ;;  %p1839_p3 = scmp.lt.s32.totalorder %s1392_s16, %s1392_s16 }
  0x30   :  { %p1835_p2 = scmp.ne.s32.totalorder %s1392_s16, %s1834_s1  ;;  %p1840_p4 = scmp.lt.s32.totalorder %s1834_s1, %s1834_s1 }
  0x31   :  { %1513 = vmatmul.mubr.msk.f32.vlgmr.msra.gmra.mrb[0].mxu1 %vm91_vm0, %v2001_v7 }
  0x32   :  { %p1841_p5 = por %p1840_p4, %p1839_p3 }
  0x34   :  { %p1842_p6 = pnand %p1841_p5, %p1835_p2 }
 0x104   :  { %v1514_v9 = vpop.f32.mrb[0].mxu1 }
 0x105   :  { %v170_v10 = vadd.f32 %v1514_v9, %v1404_v8  ;;  %v164_v11 = vpop.f32.mrb[1].mxu1 }
 0x106   :  { %v165_v12 = vadd.f32 %v1404_v8, %v164_v11 }
 0x107   :  { %v2016_v15 = vmul.f32 0.35355338, %v170_v10 }
 0x108   :  { %v2008_v13 = vpack.i.bf16 %v170_v10, %v165_v12  ;;  %v2010_v14 = vmul.f32 0.35355338, %v165_v12 }
 0x10a   :  { %1711 = vrot.lane.b32.xlu0 %v2008_v13, %s1866_s2  ;;  %377 = vrot.lane.b32.xlu1 %v2010_v14, %s1867_s18 }
 0x10b   :  { %1519 = vmatprep.mubr.msk.f32.mxu1 %vm181_vm1, %v2010_v14 }
 0x10e   :  { %1716 = vrot.lane.b32.xlu0 %v2008_v13, %s1868_s3  ;;  %379 = vrot.lane.b32.xlu1 %v2016_v15, %s1867_s18  ;;  %s1878_s3 = smov 24  }
 0x17c   :  { %v1712_v16 = vpop.permute.xlu0 %1711  ;;  %v378_v25 = vpop.permute.xlu1 %377 }
 0x17d   :  { %v1714_v17 = vunpack.i.h.bf16 %v1712_v16  ;;  %v1713_v18 = vunpack.i.l.bf16 %v1712_v16 }
 0x17f   :  { %v1620_v20 = vpack.c.bf16 %v1714_v17, %v1713_v18 }
 0x180   :  { %v1717_v21 = vpop.permute.xlu0 %1716  ;;  %v380_v26 = vpop.permute.xlu1 %379 }
 0x181   :  { %v1719_v22 = vunpack.i.h.bf16 %v1717_v21  ;;  %v1718_v23 = vunpack.i.l.bf16 %v1717_v21  ;;  %1622 = vmatprep.subr.msk.bf16.mxu1 %vm2022_vm2, %v1620_v20 }
 0x182   :  { %1625 = vmatpush3.bf16.xpose.msk.msra.mxu1 %vm2022_vm2, %v1620_v20 }
 0x183   :  { %v1630_v24 = vpack.c.bf16 %v1719_v22, %v1718_v23 }
 0x185   :  { %1632 = vmatprep.subr.msk.bf16.mxu1 %vm2022_vm2, %v1630_v24 }
 0x189   :  { %1520 = vmatmul.mubr.msk.f32.vlgmr.msra.gmra.mrb[2].mxu1 %vm181_vm1, %v2016_v15 }
 0x18a   :  { %1635 = vmatpush3.bf16.xpose.msk.msra.mxu1 %vm2022_vm2, %v1630_v24  ;;  %1533 = vmatprep.mubr.msk.f32.mxu1 %vm181_vm1, %v378_v25 }
 0x191   :  { %1534 = vmatmul.mubr.msk.f32.vlgmr.msra.gmra.mrb[4].mxu1 %vm181_vm1, %v380_v26 }
 0x25c   :  { %v1521_v29 = vpop.f32.mrb[2].mxu1 }
 0x25d   :  { %v264_v30 = vadd.f32 %v1521_v29, %v2038_v27  ;;  %v258_v31 = vpop.f32.mrb[3].mxu1 }
 0x25e   :  { %v259_v32 = vadd.f32 %v258_v31, %v2040_v28 }
 0x25f   :  { %v271_v33 = vsel %vm267_vm3, %v264_v30, -inf }
 0x260   :  { %272 = vmax.xlane.f32.xlu1 %v271_v33  ;;  %v268_v34 = vsel %vm267_vm3, %v259_v32, -inf }
 0x261   :  { %269 = vmax.xlane.f32.xlu0 %v268_v34 }
 0x264   :  { %v1535_v35 = vpop.f32.mrb[4].mxu1 }
 0x265   :  { %v459_v36 = vpop.f32.mrb[5].mxu1  ;;  %v465_v38 = vadd.f32 %v1535_v35, %v2038_v27 }
 0x266   :  { %v460_v37 = vadd.f32 %v459_v36, %v2040_v28 }
 0x267   :  { %v471_v40 = vsel %vm267_vm3, %v465_v38, -inf }
 0x268   :  { %v468_v39 = vsel %vm267_vm3, %v460_v37, -inf }
 0x269   :  { %469 = vmax.xlane.f32.xlu0 %v468_v39 }
 0x26d   :  { %472 = vmax.xlane.f32.xlu0 %v471_v40 }
 0x271   :  { %1721 = vrot.lane.b32.xlu1 %v2008_v13, %s1869_s19 }
 0x2ed   :  { %v273_v41 = vpop.xlane.xlu1 %272 }
 0x2ee   :  { %v275_v42 = vsub.f32 %v264_v30, %v273_v41  ;;  %v270_v43 = vpop.xlane.xlu0 %269 }
 0x2ef   :  { %v274_v44 = vsub.f32 %v259_v32, %v270_v43 }
 0x2f0   :  { %v278_v45 = vmul.f32 1.442695, %v275_v42 }
 0x2f1   :  { %v276_v46 = vmul.f32 1.442695, %v274_v44  ;;  %v1722_v47 = vpop.permute.xlu1 %1721 }
 0x2f2   :  { %1750 = vpow2.f32 %v278_v45  ;;  %v1724_v48 = vunpack.i.h.bf16 %v1722_v47  ;;  %v1723_v49 = vunpack.i.l.bf16 %v1722_v47 }
 0x2f3   :  { %1752 = vpow2.f32 %v276_v46 }
 0x2f4   :  { %v1626_v50 = vpack.c.bf16 %v1724_v48, %v1723_v49 }
 0x2f6   :  { %1627 = vmatprep.subr.bf16.mxu0 %v1626_v50  ;;  %v470_v51 = vpop.xlane.xlu0 %469 }
 0x2f7   :  { %1629 = vmatpush3.bf16.msra.mxu0 %v1626_v50  ;;  %v474_v61 = vsub.f32 %v460_v37, %v470_v51 }
 0x2f9   :  { %v476_v62 = vmul.f32 1.442695, %v474_v61 }
 0x2fa   :  { %v473_v52 = vpop.xlane.xlu0 %472 }
 0x2fb   :  { %v475_v53 = vsub.f32 %v465_v38, %v473_v52 }
 0x2fc   :  { %v1751_v54 = vpop.eup %1750 }
 0x2fd   :  { %v1753_v55 = vpop.eup %1752  ;;  %v478_v56 = vmul.f32 1.442695, %v475_v53  ;;  %v283_v57 = vsel %vm267_vm3, %v1751_v54, 0.0 }
 0x2fe   :  { %284 = vadd.xlane.f32.xlu0 %v283_v57  ;;  %v280_v58 = vsel %vm267_vm3, %v1753_v55, 0.0 }
 0x2ff   :  { %1754 = vpow2.f32 %v478_v56  ;;  %281 = vadd.xlane.f32.xlu1 %v280_v58 }
 0x300   :  { %1756 = vpow2.f32 %v476_v62 }
 0x309   :  { %v1755_v59 = vpop.eup %1754 }
 0x30a   :  { %v483_v60 = vsel %vm267_vm3, %v1755_v59, 0.0  ;;  %v1757_v63 = vpop.eup %1756 }
 0x30b   :  { %484 = vadd.xlane.f32.xlu0 %v483_v60  ;;  %v480_v0 = vsel %vm267_vm3, %v1757_v63, 0.0 }
 0x310   :  { %1731 = vrot.lane.b32.xlu1 %v2008_v13, %s1870_s20 }
 0x321   :  { %1726 = vrot.lane.b32.xlu0 %v2008_v13, %s1871_s21 }
 0x325   :  { %579 = vrot.lane.b32.xlu0 %v2016_v15, %s1872_s0 }
 0x334   :  { %481 = vadd.xlane.f32.xlu1 %v480_v0 }
 0x345   :  { %577 = vrot.lane.b32.xlu1 %v2010_v14, %s1872_s0 }
 0x38b   :  { %v285_v1 = vpop.xlane.xlu0 %284 }
 0x38c   :  { %1758 = vrcp.f32 %v285_v1  ;;  %v282_v2 = vpop.xlane.xlu1 %281 }
 0x38d   :  { %1760 = vrcp.f32 %v282_v2 }
 0x390   :  { %v1732_v10 = vpop.permute.xlu1 %1731 }
 0x391   :  { %v1734_v12 = vunpack.i.h.bf16 %v1732_v10  ;;  %v1733_v16 = vunpack.i.l.bf16 %v1732_v10 }
 0x393   :  { %v1640_v21 = vpack.c.bf16 %v1734_v12, %v1733_v16 }
 0x396   :  { %v1759_v3 = vpop.eup %1758 }
 0x397   :  { %v1761_v4 = vpop.eup %1760  ;;  %v289_v9 = vmul.f32 %v1759_v3, %v1751_v54 }
 0x398   :  { %v485_v6 = vpop.xlane.xlu0 %484  ;;  %v288_v8 = vmul.f32 %v1761_v4, %v1753_v55 }
 0x399   :  { %1762 = vrcp.f32 %v485_v6 }
 0x39a   :  { %1526 = vmatprep.mubr.msk.f32.mxu0 %vm267_vm3, %v288_v8 }
 0x39b   :  { %1527 = vmatmul.mubr.msk.f32.vlgmr.msra.gmra.mrb[0].mxu0 %vm267_vm3, %v289_v9 }
 0x39c   :  { %v1727_v11 = vpop.permute.xlu0 %1726 }
 0x39d   :  { %v1729_v17 = vunpack.i.h.bf16 %v1727_v11  ;;  %v1728_v18 = vunpack.i.l.bf16 %v1727_v11 }
 0x39f   :  { %v1636_v20 = vpack.c.bf16 %v1729_v17, %v1728_v18 }
 0x3a0   :  { %v580_v30 = vpop.permute.xlu0 %579 }
 0x3a1   :  { %1637 = vmatprep.subr.bf16.mxu0 %v1636_v20 }
 0x3a2   :  { %1639 = vmatpush3.bf16.msra.mxu0 %v1636_v20 }
 0x3a3   :  { %1642 = vmatprep.subr.msk.bf16.mxu0 %vm2022_vm2, %v1640_v21  ;;  %v1763_v23 = vpop.eup %1762 }
 0x3a4   :  { %v489_v26 = vmul.f32 %v1763_v23, %v1755_v59 }
 0x3c1   :  { %v482_v22 = vpop.xlane.xlu1 %481 }
 0x3c2   :  { %1764 = vrcp.f32 %v482_v22 }
 0x3c5   :  { %v578_v29 = vpop.permute.xlu1 %577 }
 0x3cc   :  { %v1765_v24 = vpop.eup %1764 }
 0x3cd   :  { %v488_v25 = vmul.f32 %v1765_v24, %v1757_v63 }
 0x3cf   :  { %1540 = vmatprep.mubr.msk.f32.mxu0 %vm267_vm3, %v488_v25 }
 0x3d0   :  { %1541 = vmatmul.mubr.msk.f32.vlgmr.msra.gmra.mrb[2].mxu0 %vm267_vm3, %v489_v26 }
 0x3d1   :  { %1645 = vmatpush3.bf16.xpose.msk.msra.mxu0 %vm2022_vm2, %v1640_v21  ;;  %1547 = vmatprep.mubr.msk.f32.mxu0 %vm181_vm1, %v578_v29 }
 0x3d8   :  { %1548 = vmatmul.mubr.msk.f32.vlgmr.msra.gmra.mrb[4].mxu0 %vm181_vm1, %v580_v30 }
 0x46e   :  { %v2069_v31 = vpop.f32.mrb[0].mxu0 }
 0x46f   :  { %v2071_v32 = vpop.f32.mrb[1].mxu0 }
 0x4a3   :  { %v2073_v33 = vpop.f32.mrb[2].mxu0 }
 0x4a4   :  { %v2075_v34 = vpop.f32.mrb[3].mxu0 }
 0x4ab   :  { %v1549_v35 = vpop.f32.mrb[4].mxu0 }
 0x4ac   :  { %v665_v36 = vadd.f32 %v1549_v35, %v2038_v27  ;;  %v659_v37 = vpop.f32.mrb[5].mxu0 }
 0x4ad   :  { %v660_v38 = vadd.f32 %v659_v37, %v2040_v28  ;;  %v1010_v37 = vld [vmem:[%s2218_s4 + $0x10] sm:$0xff] }
 0x4ae   :  { %v671_v39 = vsel %vm267_vm3, %v665_v36, -inf }
 0x4af   :  { %672 = vmax.xlane.f32.xlu0 %v671_v39  ;;  %v668_v40 = vsel %vm267_vm3, %v660_v38, -inf  ;;  %v1011_v39 = vld [vmem:[%s2218_s4 + $0x18] sm:$0xff] }
 0x4b0   :  { %669 = vmax.xlane.f32.xlu1 %v668_v40  ;;  %v1664_v40 = vpack.c.bf16 %v1011_v39, %v1010_v37 }
 0x53c   :  { %v673_v41 = vpop.xlane.xlu0 %672 }
 0x53d   :  { %v675_v42 = vsub.f32 %v665_v36, %v673_v41  ;;  %v670_v43 = vpop.xlane.xlu1 %669  ;;  %v1009_v36 = vld [vmem:[%s2218_s4 + $0x8] sm:$0xff] }
 0x53e   :  { %v674_v44 = vsub.f32 %v660_v38, %v670_v43 }
 0x53f   :  { %v678_v45 = vmul.f32 1.442695, %v675_v42 }
 0x540   :  { %v676_v46 = vmul.f32 1.442695, %v674_v44 }
 0x541   :  { %1766 = vpow2.f32 %v678_v45 }
 0x542   :  { %1768 = vpow2.f32 %v676_v46 }
 0x54b   :  { %v1767_v47 = vpop.eup %1766 }
 0x54c   :  { %v1769_v48 = vpop.eup %1768  ;;  %v683_v49 = vsel %vm267_vm3, %v1767_v47, 0.0 }
 0x54d   :  { %684 = vadd.xlane.f32.xlu1 %v683_v49  ;;  %v680_v50 = vsel %vm267_vm3, %v1769_v48, 0.0 }
 0x54e   :  { %681 = vadd.xlane.f32.xlu0 %v680_v50 }
 0x55e   :  { %1741 = vrot.lane.b32.xlu1 %v2008_v13, %s1873_s30 }
 0x562   :  { %777 = vrot.lane.b32.xlu1 %v2010_v14, %s1874_s22 }
 0x564   :  { %1736 = vrot.lane.b32.xlu0 %v2008_v13, %s1875_s25 }
 0x568   :  { %779 = vrot.lane.b32.xlu0 %v2016_v15, %s1874_s22 }
 0x5da   :  { %v685_v51 = vpop.xlane.xlu1 %684 }
 0x5db   :  { %1770 = vrcp.f32 %v685_v51  ;;  %v682_v52 = vpop.xlane.xlu0 %681 }
 0x5dc   :  { %1772 = vrcp.f32 %v682_v52 }
 0x5de   :  { %v1742_v53 = vpop.permute.xlu1 %1741 }
 0x5df   :  { %v1737_v54 = vpop.permute.xlu0 %1736  ;;  %v1744_v55 = vunpack.i.h.bf16 %v1742_v53  ;;  %v1743_v56 = vunpack.i.l.bf16 %v1742_v53 }
 0x5e0   :  { %v1739_v57 = vunpack.i.h.bf16 %v1737_v54  ;;  %v1738_v58 = vunpack.i.l.bf16 %v1737_v54 }
 0x5e1   :  { %v1650_v60 = vpack.c.bf16 %v1744_v55, %v1743_v56  ;;  %v1431_v55 = vld [vmem:[%s2219_s5] ss:$0 sm:$0xff] }
 0x5e2   :  { %v1646_v59 = vpack.c.bf16 %v1739_v57, %v1738_v58  ;;  %v778_v63 = vpop.permute.xlu1 %777 }
 0x5e3   :  { %v780_v0 = vpop.permute.xlu0 %779 }
 0x5e4   :  { %1647 = vmatprep.subr.bf16.mxu1 %v1646_v59 }
 0x5e5   :  { %v1771_v61 = vpop.eup %1770  ;;  %1649 = vmatpush3.bf16.msra.mxu1 %v1646_v59 }
 0x5e6   :  { %v1773_v14 = vpop.eup %1772  ;;  %1652 = vmatprep.subr.msk.bf16.mxu1 %vm2022_vm2, %v1650_v60  ;;  %v689_v62 = vmul.f32 %v1771_v61, %v1767_v47 }
 0x5e7   :  { %v688_v15 = vmul.f32 %v1773_v14, %v1769_v48 }
 0x5e9   :  { %1554 = vmatprep.mubr.msk.f32.mxu1 %vm267_vm3, %v688_v15 }
 0x5ea   :  { %1555 = vmatmul.mubr.msk.f32.vlgmr.msra.gmra.mrb[6].mxu1 %vm267_vm3, %v689_v62 }
 0x5eb   :  { %1561 = vmatprep.mubr.msk.f32.mxu1 %vm181_vm1, %v778_v63 }
 0x5ee   :  { %1655 = vmatpush3.bf16.xpose.msk.msra.mxu1 %vm2022_vm2, %v1650_v60 }
 0x5f5   :  { %1562 = vmatmul.mubr.msk.f32.vlgmr.msra.gmra.mrb[8].mxu1 %vm181_vm1, %v780_v0 }
 0x6bd   :  { %v1556_v1 = vpop.f32.mrb[6].mxu1 }
 0x6be   :  { %v768_v2 = vpop.f32.mrb[7].mxu1 }
 0x6c8   :  { %v1563_v3 = vpop.f32.mrb[8].mxu1 }
 0x6c9   :  { %v865_v4 = vadd.f32 %v1563_v3, %v2038_v27  ;;  %v859_v6 = vpop.f32.mrb[9].mxu1 }
 0x6ca   :  { %v860_v8 = vadd.f32 %v859_v6, %v2040_v28  ;;  %v1148_v6 = vld [vmem:[%s2220_s6 + $0x8] sm:$0xff] }
 0x6cb   :  { %v871_v9 = vsel %vm267_vm3, %v865_v4, -inf }
 0x6cc   :  { %872 = vmax.xlane.f32.xlu0 %v871_v9  ;;  %v868_v10 = vsel %vm267_vm3, %v860_v8, -inf  ;;  %v1149_v9 = vld [vmem:[%s2220_s6 + $0x10] sm:$0xff] }
 0x6cd   :  { %869 = vmax.xlane.f32.xlu1 %v868_v10  ;;  %v1150_v10 = vld [vmem:[%s2220_s6 + $0x18] sm:$0xff] }
 0x759   :  { %v873_v11 = vpop.xlane.xlu0 %872 }
 0x75a   :  { %v875_v19 = vsub.f32 %v865_v4, %v873_v11  ;;  %v870_v12 = vpop.xlane.xlu1 %869  ;;  %v1672_v11 = vpack.c.bf16 %v1150_v10, %v1149_v9  ;;  %v1442_v9 = vld [vmem:[%s2226_s12] ss:$0 sm:$0xff] }
 0x75b   :  { %v874_v16 = vsub.f32 %v860_v8, %v870_v12  ;;  %v1242_v12 = vld [vmem:[%s2222_s8 + $0x8] sm:$0xff] }
 0x75c   :  { %v878_v17 = vmul.f32 1.442695, %v875_v19  ;;  %v1241_v19 = vld [vmem:[%s2222_s8] sm:$0xff] }
 0x75d   :  { %v876_v18 = vmul.f32 1.442695, %v874_v16  ;;  %v1243_v16 = vld [vmem:[%s2222_s8 + $0x10] sm:$0xff] }
 0x75e   :  { %1774 = vpow2.f32 %v878_v17  ;;  %v1676_v17 = vpack.c.bf16 %v1242_v12, %v1241_v19  ;;  %v1443_v12 = vld [vmem:[%s2227_s13] ss:$0 sm:$0xff] }
 0x75f   :  { %1776 = vpow2.f32 %v876_v18  ;;  %v1244_v18 = vld [vmem:[%s2222_s8 + $0x18] sm:$0xff] }
 0x768   :  { %v1775_v20 = vpop.eup %1774 }
 0x769   :  { %v1777_v21 = vpop.eup %1776  ;;  %v883_v27 = vsel %vm267_vm3, %v1775_v20, 0.0 }
 0x76a   :  { %884 = vadd.xlane.f32.xlu1 %v883_v27  ;;  %v880_v28 = vsel %vm267_vm3, %v1777_v21, 0.0  ;;  %v1246_v27 = vld [vmem:[%s2222_s8 + $0x28] sm:$0xff] }
 0x76b   :  { %881 = vadd.xlane.f32.xlu0 %v880_v28 }
 0x77b   :  { %979 = vrot.lane.b32.xlu1 %v2075_v34, %s1864_s24 }
 0x77f   :  { %981 = vrot.lane.b32.xlu1 %v2073_v33, %s1864_s24 }
 0x781   :  { %1746 = vrot.lane.b32.xlu0 %v2008_v13, %s1876_s26  ;;  %v1008_v13 = vld [vmem:[%s2218_s4] sm:$0xff] }
 0x782   :  { %v1660_v38 = vpack.c.bf16 %v1009_v36, %v1008_v13 }
 0x783   :  { %989 = vrot.lane.b32.xlu1 %v1556_v1, %s1877_s27 }
 0x785   :  { %987 = vrot.lane.b32.xlu0 %v768_v2, %s1877_s27 }
 0x7f7   :  { %v885_v22 = vpop.xlane.xlu1 %884 }
 0x7f8   :  { %1778 = vrcp.f32 %v885_v22  ;;  %v882_v23 = vpop.xlane.xlu0 %881 }
 0x7f9   :  { %1780 = vrcp.f32 %v882_v23 }
 0x7fb   :  { %v980_v43 = vpop.permute.xlu1 %979 }
 0x7fc   :  { %v1747_v24 = vpop.permute.xlu0 %1746  ;;  %v1001_v47 = vsel %vm181_vm1, %v2071_v32, %v980_v43 }
 0x7fd   :  { %v1749_v25 = vunpack.i.h.bf16 %v1747_v24  ;;  %v1748_v26 = vunpack.i.l.bf16 %v1747_v24 }
 0x7ff   :  { %v1656_v29 = vpack.c.bf16 %v1749_v25, %v1748_v26  ;;  %v982_v44 = vpop.permute.xlu1 %981 }
 0x800   :  { %v988_v46 = vpop.permute.xlu0 %987  ;;  %v1002_v49 = vsel %vm181_vm1, %v2069_v31, %v982_v44  ;;  %v1436_v44 = vld [vmem:[%s2221_s7] ss:$0 sm:$0xff] }
 0x801   :  { %1657 = vmatprep.subr.bf16.mxu0 %v1656_v29  ;;  %v1003_v50 = vsel %vm267_vm3, %v1001_v47, %v988_v46 }
 0x802   :  { %v1779_v30 = vpop.eup %1778  ;;  %1659 = vmatpush3.bf16.msra.mxu0 %v1656_v29 }
 0x803   :  { %v1781_v34 = vpop.eup %1780  ;;  %v889_v33 = vmul.f32 %v1779_v30, %v1775_v20  ;;  %1661 = vmatprep.subr.bf16.mxu0 %v1660_v38  ;;  %v990_v45 = vpop.permute.xlu1 %989  ;;  %v1680_v20 = vpack.c.bf16 %v1244_v18, %v1243_v16 }
 0x804   :  { %v888_v35 = vmul.f32 %v1781_v34, %v1777_v21  ;;  %v1004_v52 = vsel %vm267_vm3, %v1002_v49, %v990_v45  ;;  %v1245_v21 = vld [vmem:[%s2222_s8 + $0x20] sm:$0xff] }
 0x805   :  { %v1684_v28 = vpack.c.bf16 %v1246_v27, %v1245_v21  ;;  %v1434_v34 = vld [vmem:[%s2224_s10] ss:$0 sm:$0xff] }
 0x806   :  { %1568 = vmatprep.mubr.msk.f32.mxu0 %vm267_vm3, %v888_v35 }
 0x807   :  { %1569 = vmatmul.mubr.msk.f32.vlgmr.msra.gmra.mrb[6].mxu0 %vm267_vm3, %v889_v33  ;;  %v1435_v33 = vld [vmem:[%s2225_s11] ss:$0 sm:$0xff] }
 0x808   :  { %1663 = vmatpush3.bf16.msra.mxu0 %v1660_v38 }
 0x809   :  { %1665 = vmatprep.subr.bf16.mxu0 %v1664_v40 }
 0x80c   :  { %1667 = vmatpush3.bf16.msra.mxu0 %v1664_v40 }
 0x80d   :  { %1677 = vmatprep.subr.bf16.mxu0 %v1676_v17 }
 0x8da   :  { %v1570_v41 = vpop.f32.mrb[6].mxu0 }
 0x8db   :  { %997 = vrot.lane.b32.xlu1 %v1570_v41, %s1878_s3  ;;  %v968_v42 = vpop.f32.mrb[7].mxu0  ;;  %v1247_v41 = vld [vmem:[%s2222_s8 + $0x30] sm:$0xff] }
 0x8dc   :  { %995 = vrot.lane.b32.xlu0 %v968_v42, %s1878_s3  ;;  %v1248_v42 = vld [vmem:[%s2222_s8 + $0x38] sm:$0xff] }
 0x8dd   :  { %v1688_v43 = vpack.c.bf16 %v1248_v42, %v1247_v41 }
 0x94d   :  { %v998_v48 = vpop.permute.xlu1 %997 }
 0x94e   :  { %v996_v51 = vpop.permute.xlu0 %995  ;;  %v1007_v54 = vsel %vm1005_vm4, %v1004_v52, %v998_v48 }
 0x94f   :  { %v1006_v53 = vsel %vm1005_vm4, %v1003_v50, %v996_v51  ;;  %v1439_v51 = vld [vmem:[%s2223_s9] ss:$0 sm:$0xff] }
 0x950   :  { %1579 = vmatprep.mubr.msk.f32.mxu0 %vm91_vm0, %v1006_v53 }
 0x951   :  { %1580 = vmatmul.mubr.msk.f32.vlgmr.msra.gmra.mrb[8].mxu0 %vm91_vm0, %v1007_v54 }
 0x952   :  { %1679 = vmatpush3.bf16.msra.mxu0 %v1676_v17 }
 0x953   :  { %1681 = vmatprep.subr.bf16.mxu0 %v1680_v20 }
 0x956   :  { %1683 = vmatpush3.bf16.msra.mxu0 %v1680_v20 }
 0x957   :  { %1685 = vmatprep.subr.bf16.mxu0 %v1684_v28 }
 0x95a   :  { %1687 = vmatpush3.bf16.msra.mxu0 %v1684_v28 }
 0x95b   :  { %1689 = vmatprep.subr.bf16.mxu0 %v1688_v43 }
 0x95e   :  { %1691 = vmatpush3.bf16.msra.mxu0 %v1688_v43 }
 0xa24   :  { %v1581_v32 = vpop.f32.mrb[8].mxu0 }
 0xa25   :  { %v1097_v56 = vadd.f32 %v1581_v32, %v1431_v55  ;;  %v1091_v57 = vpop.f32.mrb[9].mxu0 }
 0xa26   :  { %v1092_v58 = vadd.f32 %v1431_v55, %v1091_v57 }
 0xa27   :  { %v1101_v31 = vadd.f32 %v1097_v56, %v2001_v7 }
 0xa28   :  { %v1100_v59 = vadd.f32 %v1092_v58, %v1997_v5  ;;  %v1147_v5 = vld [vmem:[%s2220_s6] sm:$0xff] }
 0xa29   :  { %v1107_v60 = vsel %vm91_vm0, %v1101_v31, 0.0  ;;  %v1668_v8 = vpack.c.bf16 %v1148_v6, %v1147_v5 }
 0xa2a   :  { %1108 = vadd.xlane.f32.xlu1 %v1107_v60  ;;  %v1104_v61 = vsel %vm91_vm0, %v1100_v59, 0.0 }
 0xa2b   :  { %1105 = vadd.xlane.f32.xlu0 %v1104_v61  ;;  %1669 = vmatprep.subr.bf16.mxu1 %v1668_v8 }
 0xa2c   :  { %1671 = vmatpush3.bf16.msra.mxu1 %v1668_v8 }
 0xa2d   :  { %1673 = vmatprep.subr.bf16.mxu1 %v1672_v11 }
 0xa30   :  { %1675 = vmatpush3.bf16.msra.mxu1 %v1672_v11 }
 0xab7   :  { %v1109_v14 = vpop.xlane.xlu1 %1108 }
 0xab8   :  { %v1112_v15 = vmul.f32 0.03125, %v1109_v14  ;;  %v1106_v62 = vpop.xlane.xlu0 %1105 }
 0xab9   :  { %v1111_v63 = vmul.f32 0.03125, %v1106_v62 }
 0xaba   :  { %v1114_v0 = vsub.f32 %v1101_v31, %v1112_v15 }
 0xabb   :  { %v1113_v1 = vsub.f32 %v1100_v59, %v1111_v63 }
 0xabc   :  { %v1116_v4 = vmul.f32 %v1114_v0, %v1114_v0 }
 0xabd   :  { %v1115_v2 = vmul.f32 %v1113_v1, %v1113_v1 }
 0xabe   :  { %v1120_v7 = vsel %vm91_vm0, %v1116_v4, 0.0 }
 0xabf   :  { %v1117_v3 = vsel %vm91_vm0, %v1115_v2, 0.0 }
 0xac0   :  { %1118 = vadd.xlane.f32.xlu0 %v1117_v3 }
 0xac4   :  { %1121 = vadd.xlane.f32.xlu0 %v1120_v7 }
 0xb4d   :  { %v1119_v22 = vpop.xlane.xlu0 %1118 }
 0xb4e   :  { %v1123_v23 = vmul.f32 0.03125, %v1119_v22 }
 0xb50   :  { %v1125_v24 = vadd.f32 1e-05, %v1123_v23 }
 0xb51   :  { %v1122_v25 = vpop.xlane.xlu0 %1121 }
 0xb52   :  { %1782 = vrsqrt.f32 %v1125_v24  ;;  %v1124_v26 = vmul.f32 0.03125, %v1122_v25 }
 0xb54   :  { %v1126_v29 = vadd.f32 1e-05, %v1124_v26 }
 0xb56   :  { %1784 = vrsqrt.f32 %v1126_v29 }
 0xb5c   :  { %v1783_v30 = vpop.eup %1782 }
 0xb5d   :  { %v1129_v35 = vmul.f32 %v1783_v30, %v1113_v1 }
 0xb5f   :  { %v1137_v13 = vmul.f32 %v1434_v34, %v1129_v35 }
 0xb60   :  { %v1785_v36 = vpop.eup %1784 }
 0xb61   :  { %v1130_v37 = vmul.f32 %v1785_v36, %v1114_v0  ;;  %v1145_v38 = vadd.f32 %v1435_v33, %v1137_v13 }
 0xb63   :  { %v1138_v39 = vmul.f32 %v1434_v34, %v1130_v37  ;;  %1590 = vmatprep.mubr.msk.f32.mxu1 %vm91_vm0, %v1145_v38 }
 0xb65   :  { %v1146_v40 = vadd.f32 %v1435_v33, %v1138_v39 }
 0xb67   :  { %1591 = vmatmul.mubr.msk.f32.vlgmr.msra.gmra.mrb[10].mxu1 %vm91_vm0, %v1146_v40 }
 0xc3a   :  { %v1592_v45 = vpop.f32.mrb[10].mxu1 }
 0xc3b   :  { %v1236_v46 = vadd.f32 %v1592_v45, %v1436_v44  ;;  %v1230_v47 = vpop.f32.mrb[11].mxu1 }
 0xc3c   :  { %v1231_v48 = vadd.f32 %v1436_v44, %v1230_v47 }
 0xc3d   :  { %v1240_v50 = vmax.f32 %v1236_v46, 0.0 }
 0xc3e   :  { %v1239_v49 = vmax.f32 %v1231_v48, 0.0 }
 0xc40   :  { %1609 = vmatprep.mubr.msk.f32.mxu0 %vm1256_vm5, %v1239_v49 }
 0xc41   :  { %1610 = vmatmul.mubr.msk.f32.vlgmr.msra.gmra.mrb[10].mxu0 %vm1256_vm5, %v1240_v50 }
 0xd14   :  { %v1611_v52 = vpop.f32.mrb[10].mxu0 }
 0xd15   :  { %v1335_v53 = vadd.f32 %v1611_v52, %v1439_v51  ;;  %v1329_v54 = vpop.f32.mrb[11].mxu0 }
 0xd16   :  { %v1330_v55 = vadd.f32 %v1439_v51, %v1329_v54 }
 0xd17   :  { %v1339_v32 = vadd.f32 %v1335_v53, %v1146_v40 }
 0xd18   :  { %v1338_v56 = vadd.f32 %v1330_v55, %v1145_v38 }
 0xd19   :  { %v1345_v57 = vsel %vm91_vm0, %v1339_v32, 0.0 }
 0xd1a   :  { %1346 = vadd.xlane.f32.xlu0 %v1345_v57  ;;  %v1342_v58 = vsel %vm91_vm0, %v1338_v56, 0.0 }
 0xd1b   :  { %1343 = vadd.xlane.f32.xlu1 %v1342_v58 }
 0xda7   :  { %v1347_v31 = vpop.xlane.xlu0 %1346 }
 0xda8   :  { %v1349_v59 = vmul.f32 0.03125, %v1347_v31  ;;  %v1344_v60 = vpop.xlane.xlu1 %1343 }
 0xda9   :  { %v1348_v61 = vmul.f32 0.03125, %v1344_v60 }
 0xdaa   :  { %v1351_v14 = vsub.f32 %v1339_v32, %v1349_v59 }
 0xdab   :  { %v1350_v15 = vsub.f32 %v1338_v56, %v1348_v61 }
 0xdac   :  { %v1353_v62 = vmul.f32 %v1351_v14, %v1351_v14 }
 0xdad   :  { %v1352_v63 = vmul.f32 %v1350_v15, %v1350_v15 }
 0xdae   :  { %v1357_v0 = vsel %vm91_vm0, %v1353_v62, 0.0 }
 0xdaf   :  { %1358 = vadd.xlane.f32.xlu0 %v1357_v0  ;;  %v1354_v1 = vsel %vm91_vm0, %v1352_v63, 0.0 }
 0xdb0   :  { %1355 = vadd.xlane.f32.xlu1 %v1354_v1 }
 0xe3c   :  { %v1359_v2 = vpop.xlane.xlu0 %1358 }
 0xe3d   :  { %v1361_v3 = vmul.f32 0.03125, %v1359_v2  ;;  %v1356_v4 = vpop.xlane.xlu1 %1355 }
 0xe3e   :  { %v1360_v7 = vmul.f32 0.03125, %v1356_v4 }
 0xe3f   :  { %v1363_v5 = vadd.f32 1e-05, %v1361_v3 }
 0xe40   :  { %v1362_v6 = vadd.f32 1e-05, %v1360_v7 }
 0xe41   :  { %1786 = vrsqrt.f32 %v1363_v5 }
 0xe42   :  { %1788 = vrsqrt.f32 %v1362_v6 }
 0xe4b   :  { %v1787_v8 = vpop.eup %1786 }
 0xe4c   :  { %v1789_v10 = vpop.eup %1788  ;;  %v1367_v11 = vmul.f32 %v1787_v8, %v1351_v14 }
 0xe4d   :  { %v1366_v19 = vmul.f32 %v1789_v10, %v1350_v15 }
 0xe4e   :  { %v1375_v16 = vmul.f32 %v1442_v9, %v1367_v11 }
 0xe4f   :  { %v1374_v17 = vmul.f32 %v1442_v9, %v1366_v19 }
 0xe50   :  { %v1383_v18 = vadd.f32 %v1443_v12, %v1375_v16 }
 0xe51   :  { %v1382_v20 = vadd.f32 %v1443_v12, %v1374_v17 }
 0xe52   :  { %1385 = vst.msk [vmem:[#allocation7 + $0x8] sm:$0xff] %vm91_vm0, %v1383_v18 }
 0xe53   :  { %1384 = vst.msk [vmem:[#allocation7] sm:$0xff] %vm91_vm0, %v1382_v20 }
 0xe54   :  { %1845 = shalt.err (!%p1842_p6)
}
 0xe55   :  { %s1846_s28 = scalar_lea.hbm %s2228_s14, 256 }
 0xe56   :  { %p1847_p7 = scmp.ne.s32.totalorder %s2228_s14, %s1846_s28  ;;  %p1850_p8 = scmp.lt.u32.totalorder %s1846_s28, %s2228_s14 }
 0xe58   :  { %p1852_p9 = pnand %p1850_p8, %p1847_p7 }
 0xe5a   :  { %1855 = shalt.err (!%p1852_p9)
}
 0xe5b   :  { %1397 = dma.vmem_to_hbm [thread:$0]  %s1392_s16, 256, %s2228_s14, [#allocation4], %s1863_s23, %s1863_s23, %s1864_s24  }
 0xe5c   :  { %1860 = dma.done.wait [#allocation4], 256  }
 0xe5d   :  { %1861 = vsyncadd [#allocation4], 4294967040 }
 0xe5e   :  { %1401 = vsyncpa [#allocation3], 1 }
 0xe5f   :  { %1402 = vsyncpa [#allocation6], 1 }
 0xe60   :  { %1403 = vsyncpa [#allocation4], 1 }

</bundles_post_ra>
